<compile_context>
chip_gen: v7x
topology: tpu7x:2x2x1
jax: 0.10.0
libtpu: 0.0.40
codegen_flags: <defaults>
</compile_context>

<pallas_src>
import jax
import jax.numpy as jnp
from jax.experimental import pallas as pl
from jax.experimental.pallas import tpu as pltpu

# Module-implied sizes (faithful to DropoutClassifier(768*2, 2, 200)).
D_BERT = 768          # BERT hidden size
H_CLS = 200           # DropoutClassifier hidden_size
H_PAD = 256           # padded hidden (clean multiple of 128 lanes)
N_OUT = 2             # output classes
O_PAD = 128           # lane-dense padded output width
SEQ = 8               # number of input tokens (small demo size)


def _round_up(x, m):
    return (x + m - 1) // m * m


def _seg_classifier_kernel(hlo_ref, hhi_ref, w1a_ref, w1b_ref, b1_ref,
                           w3_ref, b3_ref, o_ref):
    """Concat-free pairwise classifier: relu(h_lo@W1a + h_hi@W1b + b1)@W3 + b3."""
    # dropout1 (p=0.2): identity in eval mode
    y = jnp.dot(hlo_ref[...], w1a_ref[...], preferred_element_type=jnp.float32)
    y = y + jnp.dot(hhi_ref[...], w1b_ref[...],
                    preferred_element_type=jnp.float32)
    y = jnp.maximum(y + b1_ref[...], 0.0)            # clamp(min=0), f32
    # dropout2 (p=0.5): identity in eval mode
    out = jnp.dot(y.astype(jnp.bfloat16), w3_ref[...],
                  preferred_element_type=jnp.float32)
    o_ref[...] = (out + b3_ref[...]).astype(o_ref.dtype)


@jax.jit
def word_segmentation_head(hidden_states, w1a, w1b, b1, w3, b3):
    """hidden_states: (S, 768) f32.  Returns logits (S-1, 2) f32."""
    S, D = hidden_states.shape
    M = S - 1

    # Wrapper-side layout plumbing: shifted views + bf16 cast (halves DMA).
    h_lo = hidden_states[:M].astype(jnp.bfloat16)    # h[i]
    h_hi = hidden_states[1:].astype(jnp.bfloat16)    # h[i+1]

    # Row tiling: 128-row tiles for BERT-scale S, full (sublane-rounded) block
    # for tiny S.  Pad rows with zeros; padded rows are sliced off below.
    row_tile = 128 if M > 128 else _round_up(M, 8)
    m_pad = _round_up(M, row_tile)
    if m_pad != M:
        h_lo = jnp.pad(h_lo, ((0, m_pad - M), (0, 0)))
        h_hi = jnp.pad(h_hi, ((0, m_pad - M), (0, 0)))

    out_padded = pl.pallas_call(
        _seg_classifier_kernel,
        out_shape=jax.ShapeDtypeStruct((m_pad, O_PAD), jnp.float32),
        grid=(m_pad // row_tile,),
        in_specs=[
            pl.BlockSpec((row_tile, D), lambda i: (i, 0)),    # h[i]
            pl.BlockSpec((row_tile, D), lambda i: (i, 0)),    # h[i+1]
            pl.BlockSpec((D, H_PAD), lambda i: (0, 0)),       # W1 top half
            pl.BlockSpec((D, H_PAD), lambda i: (0, 0)),       # W1 bottom half
            pl.BlockSpec((1, H_PAD), lambda i: (0, 0)),       # b1
            pl.BlockSpec((H_PAD, O_PAD), lambda i: (0, 0)),   # W3
            pl.BlockSpec((1, O_PAD), lambda i: (0, 0)),       # b3
        ],
        out_specs=pl.BlockSpec((row_tile, O_PAD), lambda i: (i, 0)),
        compiler_params=pltpu.CompilerParams(
            dimension_semantics=("parallel",)),
    )(h_lo, h_hi, w1a, w1b, b1, w3, b3)

    # Slice off row padding and the lane padding of the output slab.
    return out_padded[:M, :N_OUT]


def naive_bert_for_word_segmentation(hidden_states, params, labels=None):
    """Mirrors Naive_BertForWordSegmentation.forward: returns (result, loss)."""
    w1a, w1b, b1, w3, b3 = params
    result = word_segmentation_head(hidden_states, w1a, w1b, b1, w3, b3)
    loss = None
    if labels is not None:
        # TODO(synk): PyTorch CrossEntropyLoss default ignore_index=-100 is not
        # handled; assumes all provided labels are valid class ids.
        y = labels[: result.shape[0]]
        logp = jax.nn.log_softmax(result, axis=-1)
        loss = -jnp.mean(jnp.take_along_axis(logp, y[:, None], axis=-1))
    return result, loss


def init_params(key):
    """Deterministic DropoutClassifier(1536, 2, 200) params, kernel layout.

    Returns (w1a, w1b, b1, w3, b3) where:
      w1a, w1b : (768, 256) bf16  -- split + padded + transposed Linear1 weight
      b1       : (1, 256)   f32   -- zero-padded Linear1 bias
      w3       : (256, 128) bf16  -- padded + transposed Linear3 weight
      b3       : (1, 128)   f32   -- zero-padded Linear3 bias
    """
    k1, k2, k3, k4 = jax.random.split(key, 4)
    in1, out1 = 2 * D_BERT, H_CLS
    in3, out3 = H_CLS, N_OUT
    # PyTorch Linear stores weight as (out, in); build that way first.
    w1 = jax.random.uniform(k1, (out1, in1), jnp.float32,
                            -1.0 / jnp.sqrt(in1), 1.0 / jnp.sqrt(in1))
    b1 = jax.random.uniform(k2, (1, out1), jnp.float32,
                            -1.0 / jnp.sqrt(in1), 1.0 / jnp.sqrt(in1))
    w3 = jax.random.uniform(k3, (out3, in3), jnp.float32,
                            -1.0 / jnp.sqrt(in3), 1.0 / jnp.sqrt(in3))
    b3 = jax.random.uniform(k4, (1, out3), jnp.float32,
                            -1.0 / jnp.sqrt(in3), 1.0 / jnp.sqrt(in3))

    # (out, in) -> (in, out), pad hidden 200->256, split W1 into 768-row halves.
    w1_t = jnp.pad(w1.T, ((0, 0), (0, H_PAD - H_CLS)))          # (1536, 256)
    w1a = w1_t[:D_BERT].astype(jnp.bfloat16)                    # (768, 256)
    w1b = w1_t[D_BERT:].astype(jnp.bfloat16)                    # (768, 256)
    b1_p = jnp.pad(b1, ((0, 0), (0, H_PAD - H_CLS)))            # (1, 256) f32
    w3_t = jnp.pad(w3.T, ((0, H_PAD - H_CLS), (0, O_PAD - N_OUT))
                   ).astype(jnp.bfloat16)                       # (256, 128)
    b3_p = jnp.pad(b3, ((0, 0), (0, O_PAD - N_OUT)))            # (1, 128) f32
    return (w1a, w1b, b1_p, w3_t, b3_p)


if __name__ == "__main__":
    key = jax.random.PRNGKey(0)
    k_h, k_p = jax.random.split(key)

    # Stand-in for BertModel(...).hidden_states[0][0]  -> (SEQ, 768)
    hidden_states = jax.random.normal(k_h, (SEQ, D_BERT), jnp.float32)
    params = init_params(k_p)
    labels = jnp.arange(SEQ, dtype=jnp.int32) % 2   # synthetic labels

    result, loss = naive_bert_for_word_segmentation(hidden_states, params,
                                                    labels=labels)
    jax.block_until_ready(result)
    jax.block_until_ready(loss)

    assert result.shape == (SEQ - 1, N_OUT)
    assert result.dtype == jnp.float32

    # Pure-JAX reference following the same bf16-operand / f32-accumulate path.
    w1a, w1b, b1, w3, b3 = params
    hlo = hidden_states[:-1].astype(jnp.bfloat16)
    hhi = hidden_states[1:].astype(jnp.bfloat16)
    y_ref = (jnp.dot(hlo, w1a, preferred_element_type=jnp.float32)
             + jnp.dot(hhi, w1b, preferred_element_type=jnp.float32) + b1)
    y_ref = jnp.maximum(y_ref, 0.0)
    out_ref = (jnp.dot(y_ref.astype(jnp.bfloat16), w3,
                       preferred_element_type=jnp.float32) + b3)[:, :N_OUT]
    assert jnp.allclose(result, out_ref, atol=2e-2, rtol=2e-2), (
        float(jnp.max(jnp.abs(result - out_ref))))

    print("KERNEL_OK")
</pallas_src>

<mosaic_0001>
module attributes {stable_mosaic.version = 11 : i64} {
  func.func @_seg_classifier_kernel(%arg0: i32, %arg1: memref<8x768xbf16, #tpu.memory_space<vmem>>, %arg2: memref<8x768xbf16, #tpu.memory_space<vmem>>, %arg3: memref<768x256xbf16, #tpu.memory_space<vmem>>, %arg4: memref<768x256xbf16, #tpu.memory_space<vmem>>, %arg5: memref<1x256xf32, #tpu.memory_space<vmem>>, %arg6: memref<256x128xbf16, #tpu.memory_space<vmem>>, %arg7: memref<1x128xf32, #tpu.memory_space<vmem>>, %arg8: memref<8x128xf32, #tpu.memory_space<vmem>>) attributes {dimension_semantics = [#tpu.dimension_semantics<parallel>], iteration_bounds = array<i64: 1>, scalar_prefetch = 0 : i64, scratch_operands = 0 : i64, tpu.core_type = #tpu.core_type<tc>, window_params = [{transform_indices = @transform_0, window_bounds = array<i64: 8, 768>}, {transform_indices = @transform_1, window_bounds = array<i64: 8, 768>}, {pipeline_mode = #tpu.pipeline_mode<synchronous>, transform_indices = @transform_2, window_bounds = array<i64: 768, 256>}, {pipeline_mode = #tpu.pipeline_mode<synchronous>, transform_indices = @transform_3, window_bounds = array<i64: 768, 256>}, {pipeline_mode = #tpu.pipeline_mode<synchronous>, transform_indices = @transform_4, window_bounds = array<i64: 1, 256>}, {pipeline_mode = #tpu.pipeline_mode<synchronous>, transform_indices = @transform_5, window_bounds = array<i64: 256, 128>}, {pipeline_mode = #tpu.pipeline_mode<synchronous>, transform_indices = @transform_6, window_bounds = array<i64: 1, 128>}, {transform_indices = @transform_7, window_bounds = array<i64: 8, 128>}]} {
    %c0 = arith.constant 0 : index
    %c0_0 = arith.constant 0 : index
    %0 = vector.load %arg1[%c0, %c0_0] : memref<8x768xbf16, #tpu.memory_space<vmem>>, vector<8x768xbf16>
    %c0_1 = arith.constant 0 : index
    %c0_2 = arith.constant 0 : index
    %1 = vector.load %arg3[%c0_1, %c0_2] : memref<768x256xbf16, #tpu.memory_space<vmem>>, vector<768x256xbf16>
    %cst = arith.constant dense<0.000000e+00> : vector<8x256xf32>
    %2 = tpu.matmul %0, %1, %cst {dimension_numbers = #tpu.dot_dimension_numbers<[1], [0], [0], [1], [0, 0, 1, 1], [], []>} : vector<8x768xbf16>, vector<768x256xbf16>, vector<8x256xf32> -> vector<8x256xf32>
    %c0_3 = arith.constant 0 : index
    %c0_4 = arith.constant 0 : index
    %3 = vector.load %arg2[%c0_3, %c0_4] : memref<8x768xbf16, #tpu.memory_space<vmem>>, vector<8x768xbf16>
    %c0_5 = arith.constant 0 : index
    %c0_6 = arith.constant 0 : index
    %4 = vector.load %arg4[%c0_5, %c0_6] : memref<768x256xbf16, #tpu.memory_space<vmem>>, vector<768x256xbf16>
    %cst_7 = arith.constant dense<0.000000e+00> : vector<8x256xf32>
    %5 = tpu.matmul %3, %4, %cst_7 {dimension_numbers = #tpu.dot_dimension_numbers<[1], [0], [0], [1], [0, 0, 1, 1], [], []>} : vector<8x768xbf16>, vector<768x256xbf16>, vector<8x256xf32> -> vector<8x256xf32>
    %6 = arith.addf %2, %5 : vector<8x256xf32>
    %c0_8 = arith.constant 0 : index
    %c0_9 = arith.constant 0 : index
    %7 = vector.load %arg5[%c0_8, %c0_9] : memref<1x256xf32, #tpu.memory_space<vmem>>, vector<1x256xf32>
    %8 = vector.broadcast %7 : vector<1x256xf32> to vector<8x256xf32>
    %9 = arith.addf %6, %8 : vector<8x256xf32>
    %cst_10 = arith.constant 0.000000e+00 : f32
    %10 = vector.broadcast %cst_10 : f32 to vector<8x256xf32>
    %11 = arith.maximumf %9, %10 : vector<8x256xf32>
    %12 = arith.truncf %11 : vector<8x256xf32> to vector<8x256xbf16>
    %c0_11 = arith.constant 0 : index
    %c0_12 = arith.constant 0 : index
    %13 = vector.load %arg6[%c0_11, %c0_12] : memref<256x128xbf16, #tpu.memory_space<vmem>>, vector<256x128xbf16>
    %cst_13 = arith.constant dense<0.000000e+00> : vector<8x128xf32>
    %14 = tpu.matmul %12, %13, %cst_13 {dimension_numbers = #tpu.dot_dimension_numbers<[1], [0], [0], [1], [0, 0, 1, 1], [], []>} : vector<8x256xbf16>, vector<256x128xbf16>, vector<8x128xf32> -> vector<8x128xf32>
    %c0_14 = arith.constant 0 : index
    %c0_15 = arith.constant 0 : index
    %15 = vector.load %arg7[%c0_14, %c0_15] : memref<1x128xf32, #tpu.memory_space<vmem>>, vector<1x128xf32>
    %16 = vector.broadcast %15 : vector<1x128xf32> to vector<8x128xf32>
    %17 = arith.addf %14, %16 : vector<8x128xf32>
    %c0_16 = arith.constant 0 : index
    %c0_17 = arith.constant 0 : index
    %18 = vector.load %arg8[%c0_16, %c0_17] : memref<8x128xf32, #tpu.memory_space<vmem>>, vector<8x128xf32>
    tpu.vector_store %arg8[%c0_16, %c0_17], %17 {strides = array<i32>} : memref<8x128xf32, #tpu.memory_space<vmem>>, vector<8x128xf32>,
    return
  }
  func.func @transform_0(%arg0: i32) -> (i32, i32) {
    %c0_i32 = arith.constant 0 : i32
    %c0_i32_0 = arith.constant 0 : i32
    return %arg0, %c0_i32 : i32, i32
  }
  func.func @transform_1(%arg0: i32) -> (i32, i32) {
    %c0_i32 = arith.constant 0 : i32
    %c0_i32_0 = arith.constant 0 : i32
    return %arg0, %c0_i32 : i32, i32
  }
  func.func @transform_2(%arg0: i32) -> (i32, i32) {
    %c0_i32 = arith.constant 0 : i32
    %c0_i32_0 = arith.constant 0 : i32
    %c0_i32_1 = arith.constant 0 : i32
    return %c0_i32, %c0_i32_0 : i32, i32
  }
  func.func @transform_3(%arg0: i32) -> (i32, i32) {
    %c0_i32 = arith.constant 0 : i32
    %c0_i32_0 = arith.constant 0 : i32
    %c0_i32_1 = arith.constant 0 : i32
    return %c0_i32, %c0_i32_0 : i32, i32
  }
  func.func @transform_4(%arg0: i32) -> (i32, i32) {
    %c0_i32 = arith.constant 0 : i32
    %c0_i32_0 = arith.constant 0 : i32
    %c0_i32_1 = arith.constant 0 : i32
    return %c0_i32, %c0_i32_0 : i32, i32
  }
  func.func @transform_5(%arg0: i32) -> (i32, i32) {
    %c0_i32 = arith.constant 0 : i32
    %c0_i32_0 = arith.constant 0 : i32
    %c0_i32_1 = arith.constant 0 : i32
    return %c0_i32, %c0_i32_0 : i32, i32
  }
  func.func @transform_6(%arg0: i32) -> (i32, i32) {
    %c0_i32 = arith.constant 0 : i32
    %c0_i32_0 = arith.constant 0 : i32
    %c0_i32_1 = arith.constant 0 : i32
    return %c0_i32, %c0_i32_0 : i32, i32
  }
  func.func @transform_7(%arg0: i32) -> (i32, i32) {
    %c0_i32 = arith.constant 0 : i32
    %c0_i32_0 = arith.constant 0 : i32
    return %arg0, %c0_i32 : i32, i32
  }
}

</mosaic_0001>

<bundles_post_ra>
// kernel: word_segmentation_head.1
= control target key start
LH: loop header
LB: loop body
LE: loop exit
PB: predicated region body
PF: predicated region fallthrough
CT: control target
= control target key end

     0   :  { %12 = vsyncpa [#allocation3], 0  ;;  %s2479_s0 = inlined_call_operand.vmem [shape: bf16[8,768], index: 0, kind: input, shape index: {}]   ;;  %s2480_s1 = inlined_call_operand.vmem [shape: bf16[8,768], index: 1, kind: input, shape index: {}]   ;;  %s2481_s2 = inlined_call_operand.hbm [shape: bf16[768,256], index: 2, kind: input, shape index: {}]   ;;  %s2482_s3 = inlined_call_operand.hbm [shape: bf16[768,256], index: 3, kind: input, shape index: {}]   ;;  %s2483_s4 = inlined_call_operand.vmem [shape: f32[1,256], index: 4, kind: input, shape index: {}]   ;;  %s2484_s5 = inlined_call_operand.vmem [shape: bf16[256,128], index: 5, kind: input, shape index: {}]   ;;  %s2485_s6 = inlined_call_operand.vmem [shape: f32[1,128], index: 6, kind: input, shape index: {}]   ;;  %s2486_s7 = inlined_call_operand.vmem [shape: f32[8,128], index: 7, kind: output, shape index: {}]  }
   0x1   :  { %13 = vsyncpa [#allocation5], 0  ;;  %s2312_s24 = smov [#allocation2]   ;;  %s2264_s28 = scalar_lea.hbm %s2481_s2, 12288 }
   0x2   :  { %s23_s25 = sshll.u32 %s2312_s24, 4  ;;  %p2265_p0 = scmp.ne.s32.totalorder %s2481_s2, %s2264_s28  ;;  %s24_s25 = int_to_ptr.vmem [resolvable:$true] %s23_s25 }
   0x3   :  { %p2268_p1 = scmp.lt.u32.totalorder %s2264_s28, %s2481_s2 }
   0x5   :  { %p2270_p2 = pnand %p2268_p1, %p2265_p0 }
   0x7   :  { %2273 = shalt.err (!%p2270_p2)
}
   0x8   :  { %s2274_s10 = scalar_lea.vmem %s24_s25, 12288  ;;  %p2279_p4 = scmp.lt.s32.totalorder %s24_s25, %s24_s25 }
   0x9   :  { %p2275_p3 = scmp.ne.s32.totalorder %s24_s25, %s2274_s10  ;;  %p2280_p5 = scmp.lt.s32.totalorder %s2274_s10, %s2274_s10 }
   0xb   :  { %p2281_p6 = por %p2280_p5, %p2279_p4 }
   0xd   :  { %p2282_p7 = pnand %p2281_p6, %p2275_p3 }
   0xf   :  { %2285 = shalt.err (!%p2282_p7)
}
  0x10   :  { %s2313_s11 = smov 128   ;;  %s2314_s12 = smov 8  }
  0x11   :  { %29 = dma.hbm_to_vmem [thread:$0]  %s2481_s2, 12288, %s24_s25, [#allocation3], %s2313_s11, %s2313_s11, %s2314_s12  }
  0x12   :  { %s2315_s15 = smov [#allocation4]   ;;  %s2286_s19 = scalar_lea.hbm %s2482_s3, 12288 }
  0x13   :  { %s35_s16 = sshll.u32 %s2315_s15, 4  ;;  %p2287_p8 = scmp.ne.s32.totalorder %s2482_s3, %s2286_s19  ;;  %s36_s16 = int_to_ptr.vmem [resolvable:$true] %s35_s16 }
  0x14   :  { %p2290_p9 = scmp.lt.u32.totalorder %s2286_s19, %s2482_s3 }
  0x16   :  { %p2292_p10 = pnand %p2290_p9, %p2287_p8 }
  0x18   :  { %2295 = shalt.err (!%p2292_p10)
}
  0x19   :  { %s2296_s24 = scalar_lea.vmem %s36_s16, 12288  ;;  %p2301_p12 = scmp.lt.s32.totalorder %s36_s16, %s36_s16 }
  0x1a   :  { %p2297_p11 = scmp.ne.s32.totalorder %s36_s16, %s2296_s24  ;;  %p2302_p13 = scmp.lt.s32.totalorder %s2296_s24, %s2296_s24 }
  0x1c   :  { %p2303_p0 = por %p2302_p13, %p2301_p12 }
  0x1e   :  { %p2304_p1 = pnand %p2303_p0, %p2297_p11 }
  0x20   :  { %2307 = shalt.err (!%p2304_p1)
}
  0x21   :  { %41 = dma.hbm_to_vmem [thread:$0]  %s2482_s3, 12288, %s36_s16, [#allocation5], %s2313_s11, %s2313_s11, %s2314_s12  }
  0x22   :  { %2308 = dma.done.wait [#allocation3], 12288  }
  0x23   :  { %2309 = vsyncadd [#allocation3], 4294955008 }
  0x24   :  { %2310 = dma.done.wait [#allocation5], 12288  }
  0x25   :  { %2311 = vsyncadd [#allocation5], 4294955008  ;;  %v1948_v0 = vld [vmem:[#allocation4 + $0x4] ss:$8 sps:$4 sm:$0xff]   ;;  %v1952_v2 = vld [vmem:[#allocation4] ss:$8 sps:$4 sm:$0xff]  }
  0x26   :  { %v1950_v1 = vld [vmem:[#allocation4 + $0x104] ss:$8 sps:$4 sm:$0xff]   ;;  %754 = vmatprep.subr.bf16.mxu0 %v1948_v0  ;;  %v1953_v3 = vld [vmem:[#allocation4 + $0x100] ss:$8 sps:$4 sm:$0xff]   ;;  %v1954_v4 = vld [vmem:[#allocation4 + $0x14] ss:$8 sps:$4 sm:$0xff]  }
  0x27   :  { %795 = vmatprep.subr.bf16.mxu1 %v1950_v1  ;;  %755 = vmatpush1.bf16.msra.mxu0 %v1952_v2  ;;  %v1956_v5 = vld [vmem:[#allocation4 + $0x114] ss:$8 sps:$4 sm:$0xff]   ;;  %v1958_v6 = vld [vmem:[#allocation4 + $0x10] ss:$8 sps:$4 sm:$0xff]   ;;  %v1960_v8 = vld [vmem:[#allocation4 + $0x24] ss:$8 sps:$4 sm:$0xff]  }
  0x28   :  { %796 = vmatpush1.bf16.msra.mxu1 %v1953_v3  ;;  %756 = vmatprep.subr.bf16.mxu0 %v1954_v4  ;;  %v1959_v7 = vld [vmem:[#allocation4 + $0x110] ss:$8 sps:$4 sm:$0xff]   ;;  %v1962_v9 = vld [vmem:[#allocation4 + $0x124] ss:$8 sps:$4 sm:$0xff]   ;;  %v1964_v10 = vld [vmem:[#allocation4 + $0x20] ss:$8 sps:$4 sm:$0xff]  }
  0x29   :  { %797 = vmatprep.subr.bf16.mxu1 %v1956_v5  ;;  %v1965_v11 = vld [vmem:[#allocation4 + $0x120] ss:$8 sps:$4 sm:$0xff]   ;;  %v1966_v12 = vld [vmem:[#allocation4 + $0x34] ss:$8 sps:$4 sm:$0xff]   ;;  %v1970_v14 = vld [vmem:[#allocation4 + $0x30] ss:$8 sps:$4 sm:$0xff]  }
  0x2a   :  { %v1968_v13 = vld [vmem:[#allocation4 + $0x134] ss:$8 sps:$4 sm:$0xff]   ;;  %v1971_v15 = vld [vmem:[#allocation4 + $0x130] ss:$8 sps:$4 sm:$0xff]   ;;  %v1972_v16 = vld [vmem:[#allocation4 + $0x44] ss:$8 sps:$4 sm:$0xff]  }
  0x2b   :  { %757 = vmatpush1.bf16.msra.mxu0 %v1958_v6  ;;  %v1974_v17 = vld [vmem:[#allocation4 + $0x144] ss:$8 sps:$4 sm:$0xff]   ;;  %v1976_v18 = vld [vmem:[#allocation4 + $0x40] ss:$8 sps:$4 sm:$0xff]   ;;  %v1978_v20 = vld [vmem:[#allocation4 + $0x54] ss:$8 sps:$4 sm:$0xff]  }
  0x2c   :  { %798 = vmatpush1.bf16.msra.mxu1 %v1959_v7  ;;  %758 = vmatprep.subr.bf16.mxu0 %v1960_v8  ;;  %v1977_v19 = vld [vmem:[#allocation4 + $0x140] ss:$8 sps:$4 sm:$0xff]   ;;  %v1980_v21 = vld [vmem:[#allocation4 + $0x154] ss:$8 sps:$4 sm:$0xff]   ;;  %v1982_v22 = vld [vmem:[#allocation4 + $0x50] ss:$8 sps:$4 sm:$0xff]  }
  0x2d   :  { %799 = vmatprep.subr.bf16.mxu1 %v1962_v9  ;;  %v1983_v23 = vld [vmem:[#allocation4 + $0x150] ss:$8 sps:$4 sm:$0xff]   ;;  %v1984_v24 = vld [vmem:[#allocation4 + $0x64] ss:$8 sps:$4 sm:$0xff]   ;;  %v1988_v26 = vld [vmem:[#allocation4 + $0x60] ss:$8 sps:$4 sm:$0xff]  }
  0x2e   :  { %v1986_v25 = vld [vmem:[#allocation4 + $0x164] ss:$8 sps:$4 sm:$0xff]   ;;  %v1989_v27 = vld [vmem:[#allocation4 + $0x160] ss:$8 sps:$4 sm:$0xff]   ;;  %v1990_v28 = vld [vmem:[#allocation4 + $0x74] ss:$8 sps:$4 sm:$0xff]  }
  0x2f   :  { %759 = vmatpush1.bf16.msra.mxu0 %v1964_v10  ;;  %v1992_v29 = vld [vmem:[#allocation4 + $0x174] ss:$8 sps:$4 sm:$0xff]   ;;  %v1994_v30 = vld [vmem:[#allocation4 + $0x70] ss:$8 sps:$4 sm:$0xff]   ;;  %v1996_v32 = vld [vmem:[#allocation4 + $0x84] ss:$8 sps:$4 sm:$0xff]  }
  0x30   :  { %800 = vmatpush1.bf16.msra.mxu1 %v1965_v11  ;;  %760 = vmatprep.subr.bf16.mxu0 %v1966_v12  ;;  %v1995_v31 = vld [vmem:[#allocation4 + $0x170] ss:$8 sps:$4 sm:$0xff]   ;;  %v1998_v33 = vld [vmem:[#allocation4 + $0x184] ss:$8 sps:$4 sm:$0xff]   ;;  %v2000_v34 = vld [vmem:[#allocation4 + $0x80] ss:$8 sps:$4 sm:$0xff]  }
  0x31   :  { %801 = vmatprep.subr.bf16.mxu1 %v1968_v13  ;;  %v2001_v35 = vld [vmem:[#allocation4 + $0x180] ss:$8 sps:$4 sm:$0xff]   ;;  %v2002_v36 = vld [vmem:[#allocation4 + $0x94] ss:$8 sps:$4 sm:$0xff]   ;;  %v2006_v38 = vld [vmem:[#allocation4 + $0x90] ss:$8 sps:$4 sm:$0xff]  }
  0x32   :  { %v2004_v37 = vld [vmem:[#allocation4 + $0x194] ss:$8 sps:$4 sm:$0xff]   ;;  %v2007_v39 = vld [vmem:[#allocation4 + $0x190] ss:$8 sps:$4 sm:$0xff]   ;;  %v2008_v40 = vld [vmem:[#allocation4 + $0xa4] ss:$8 sps:$4 sm:$0xff]  }
  0x33   :  { %761 = vmatpush1.bf16.msra.mxu0 %v1970_v14  ;;  %v2010_v41 = vld [vmem:[#allocation4 + $0x1a4] ss:$8 sps:$4 sm:$0xff]   ;;  %v2012_v42 = vld [vmem:[#allocation4 + $0xa0] ss:$8 sps:$4 sm:$0xff]   ;;  %v2014_v44 = vld [vmem:[#allocation4 + $0xb4] ss:$8 sps:$4 sm:$0xff]  }
  0x34   :  { %802 = vmatpush1.bf16.msra.mxu1 %v1971_v15  ;;  %762 = vmatprep.subr.bf16.mxu0 %v1972_v16  ;;  %v2013_v43 = vld [vmem:[#allocation4 + $0x1a0] ss:$8 sps:$4 sm:$0xff]   ;;  %v2016_v45 = vld [vmem:[#allocation4 + $0x1b4] ss:$8 sps:$4 sm:$0xff]   ;;  %v2018_v49 = vld [vmem:[#allocation4 + $0xb0] ss:$8 sps:$4 sm:$0xff]  }
  0x35   :  { %803 = vmatprep.subr.bf16.mxu1 %v1974_v17  ;;  %v154_v46 = vld [vmem:[%s2480_s1] sm:$0xff]  ;;  %v155_v48 = vld [vmem:[%s2480_s1 + $0x8] sm:$0xff]  ;;  %v2019_v50 = vld [vmem:[#allocation4 + $0x1b0] ss:$8 sps:$4 sm:$0xff]  }
  0x36   :  { %v1702_v47 = vcombine.high %v154_v46, %v154_v46  ;;  %v1704_v51 = vcombine.high %v155_v48, %v155_v48  ;;  %v2020_v52 = vld [vmem:[#allocation4 + $0xc4] ss:$8 sps:$4 sm:$0xff]   ;;  %v2024_v54 = vld [vmem:[#allocation4 + $0xc0] ss:$8 sps:$4 sm:$0xff]   ;;  %v2026_v56 = vld [vmem:[#allocation4 + $0xd4] ss:$8 sps:$4 sm:$0xff]   ;;  %v1701_v6 = vcombine.low %v154_v46, %v154_v46  ;;  %v1703_v7 = vcombine.low %v155_v48, %v155_v48 }
  0x37   :  { %763 = vmatpush1.bf16.msra.mxu0 %v1976_v18  ;;  %v2022_v53 = vld [vmem:[#allocation4 + $0x1c4] ss:$8 sps:$4 sm:$0xff]   ;;  %v2025_v55 = vld [vmem:[#allocation4 + $0x1c0] ss:$8 sps:$4 sm:$0xff]   ;;  %v2028_v57 = vld [vmem:[#allocation4 + $0x1d4] ss:$8 sps:$4 sm:$0xff]  }
  0x38   :  { %804 = vmatpush1.bf16.msra.mxu1 %v1977_v19  ;;  %764 = vmatprep.subr.bf16.mxu0 %v1978_v20  ;;  %v2030_v58 = vld [vmem:[#allocation4 + $0xd0] ss:$8 sps:$4 sm:$0xff]   ;;  %v2032_v60 = vld [vmem:[#allocation4 + $0xe4] ss:$8 sps:$4 sm:$0xff]   ;;  %v2036_v62 = vld [vmem:[#allocation4 + $0xe0] ss:$8 sps:$4 sm:$0xff]  }
  0x39   :  { %805 = vmatprep.subr.bf16.mxu1 %v1980_v21  ;;  %786 = vmatprep.mubr.bf16.mxu0 %v1702_v47  ;;  %v2031_v59 = vld [vmem:[#allocation4 + $0x1d0] ss:$8 sps:$4 sm:$0xff]   ;;  %v2034_v61 = vld [vmem:[#allocation4 + $0x1e4] ss:$8 sps:$4 sm:$0xff]   ;;  %v2037_v63 = vld [vmem:[#allocation4 + $0x1e0] ss:$8 sps:$4 sm:$0xff]  }
  0x3a   :  { %827 = vmatprep.mubr.bf16.mxu1 %v1704_v51  ;;  %v2038_v0 = vld [vmem:[#allocation4 + $0xf4] ss:$8 sps:$4 sm:$0xff]   ;;  %v2042_v2 = vld [vmem:[#allocation4 + $0xf0] ss:$8 sps:$4 sm:$0xff]   ;;  %v2050_v4 = vld [vmem:[#allocation4 + $0x204] ss:$8 sps:$4 sm:$0xff]  }
  0x3b   :  { %765 = vmatpush1.bf16.msra.mxu0 %v1982_v22  ;;  %v2040_v1 = vld [vmem:[#allocation4 + $0x1f4] ss:$8 sps:$4 sm:$0xff]   ;;  %v2043_v3 = vld [vmem:[#allocation4 + $0x1f0] ss:$8 sps:$4 sm:$0xff]   ;;  %v2053_v5 = vld [vmem:[#allocation2 + $0x4] ss:$8 sps:$4 sm:$0xff]  }
  0x3c   :  { %806 = vmatpush1.bf16.msra.mxu1 %v1983_v23  ;;  %766 = vmatprep.subr.bf16.mxu0 %v1984_v24  ;;  %v2048_v8 = vld [vmem:[#allocation4 + $0x200] ss:$8 sps:$4 sm:$0xff]   ;;  %v2056_v10 = vld [vmem:[#allocation4 + $0x214] ss:$8 sps:$4 sm:$0xff]   ;;  %v2054_v12 = vld [vmem:[#allocation4 + $0x210] ss:$8 sps:$4 sm:$0xff]  }
  0x3d   :  { %807 = vmatprep.subr.bf16.mxu1 %v1986_v25  ;;  %v2051_v9 = vld [vmem:[#allocation2] ss:$8 sps:$4 sm:$0xff]   ;;  %v2059_v11 = vld [vmem:[#allocation2 + $0x14] ss:$8 sps:$4 sm:$0xff]   ;;  %v2057_v13 = vld [vmem:[#allocation2 + $0x10] ss:$8 sps:$4 sm:$0xff]  }
  0x3e   :  { %v2062_v14 = vld [vmem:[#allocation4 + $0x224] ss:$8 sps:$4 sm:$0xff]   ;;  %v2060_v16 = vld [vmem:[#allocation4 + $0x220] ss:$8 sps:$4 sm:$0xff]   ;;  %v2068_v18 = vld [vmem:[#allocation4 + $0x234] ss:$8 sps:$4 sm:$0xff]  }
  0x3f   :  { %767 = vmatpush1.bf16.msra.mxu0 %v1988_v26  ;;  %v2065_v15 = vld [vmem:[#allocation2 + $0x24] ss:$8 sps:$4 sm:$0xff]   ;;  %v2063_v17 = vld [vmem:[#allocation2 + $0x20] ss:$8 sps:$4 sm:$0xff]   ;;  %v2071_v19 = vld [vmem:[#allocation2 + $0x34] ss:$8 sps:$4 sm:$0xff]  }
  0x40   :  { %808 = vmatpush1.bf16.msra.mxu1 %v1989_v27  ;;  %768 = vmatprep.subr.bf16.mxu0 %v1990_v28  ;;  %v2066_v20 = vld [vmem:[#allocation4 + $0x230] ss:$8 sps:$4 sm:$0xff]   ;;  %v2074_v22 = vld [vmem:[#allocation4 + $0x244] ss:$8 sps:$4 sm:$0xff]   ;;  %v2072_v24 = vld [vmem:[#allocation4 + $0x240] ss:$8 sps:$4 sm:$0xff]  }
  0x41   :  { %809 = vmatprep.subr.bf16.mxu1 %v1992_v29  ;;  %v2069_v21 = vld [vmem:[#allocation2 + $0x30] ss:$8 sps:$4 sm:$0xff]   ;;  %v2077_v23 = vld [vmem:[#allocation2 + $0x44] ss:$8 sps:$4 sm:$0xff]   ;;  %v2075_v25 = vld [vmem:[#allocation2 + $0x40] ss:$8 sps:$4 sm:$0xff]  }
  0x42   :  { %v2080_v26 = vld [vmem:[#allocation4 + $0x254] ss:$8 sps:$4 sm:$0xff]   ;;  %v2078_v28 = vld [vmem:[#allocation4 + $0x250] ss:$8 sps:$4 sm:$0xff]   ;;  %v2113_v51 = vld [vmem:[#allocation2 + $0xa4] ss:$8 sps:$4 sm:$0xff]  }
  0x43   :  { %769 = vmatpush1.bf16.msra.mxu0 %v1994_v30  ;;  %v2083_v27 = vld [vmem:[#allocation2 + $0x54] ss:$8 sps:$4 sm:$0xff]   ;;  %v2081_v29 = vld [vmem:[#allocation2 + $0x50] ss:$8 sps:$4 sm:$0xff]   ;;  %v2086_v30 = vld [vmem:[#allocation4 + $0x264] ss:$8 sps:$4 sm:$0xff]  }
  0x44   :  { %810 = vmatpush1.bf16.msra.mxu1 %v1995_v31  ;;  %770 = vmatprep.subr.bf16.mxu0 %v1996_v32  ;;  %v2089_v31 = vld [vmem:[#allocation2 + $0x64] ss:$8 sps:$4 sm:$0xff]   ;;  %v2389_v32 = vld [vmem:[%s2480_s1 + $0x10] sm:$0xff] }
  0x45   :  { %811 = vmatprep.subr.bf16.mxu1 %v1998_v33  ;;  %v2394_v33 = vld [vmem:[%s2479_s0] sm:$0xff]  ;;  %v2104_v46 = vld [vmem:[#allocation4 + $0x294] ss:$8 sps:$4 sm:$0xff]   ;;  %v2102_v48 = vld [vmem:[#allocation4 + $0x290] ss:$8 sps:$4 sm:$0xff]  }
  0x46   :  { %v2107_v47 = vld [vmem:[#allocation2 + $0x94] ss:$8 sps:$4 sm:$0xff]  }
  0x47   :  { %771 = vmatpush1.bf16.msra.mxu0 %v2000_v34  ;;  %v2084_v34 = vld [vmem:[#allocation4 + $0x260] ss:$8 sps:$4 sm:$0xff]  }
  0x48   :  { %812 = vmatpush1.bf16.msra.mxu1 %v2001_v35  ;;  %772 = vmatprep.subr.bf16.mxu0 %v2002_v36  ;;  %v2087_v35 = vld [vmem:[#allocation2 + $0x60] ss:$8 sps:$4 sm:$0xff]   ;;  %v1706_v36 = vcombine.high %v2389_v32, %v2389_v32 }
  0x49   :  { %813 = vmatprep.subr.bf16.mxu1 %v2004_v37  ;;  %v1804_v37 = vcombine.high %v2394_v33, %v2394_v33 }
  0x4b   :  { %773 = vmatpush1.bf16.msra.mxu0 %v2006_v38  ;;  %v2092_v38 = vld [vmem:[#allocation4 + $0x274] ss:$8 sps:$4 sm:$0xff]  }
  0x4c   :  { %814 = vmatpush1.bf16.msra.mxu1 %v2007_v39  ;;  %774 = vmatprep.subr.bf16.mxu0 %v2008_v40  ;;  %v2095_v39 = vld [vmem:[#allocation2 + $0x74] ss:$8 sps:$4 sm:$0xff]   ;;  %v2090_v40 = vld [vmem:[#allocation4 + $0x270] ss:$8 sps:$4 sm:$0xff]  }
  0x4d   :  { %815 = vmatprep.subr.bf16.mxu1 %v2010_v41  ;;  %v2093_v41 = vld [vmem:[#allocation2 + $0x70] ss:$8 sps:$4 sm:$0xff]  }
  0x4f   :  { %775 = vmatpush1.bf16.msra.mxu0 %v2012_v42  ;;  %v2098_v42 = vld [vmem:[#allocation4 + $0x284] ss:$8 sps:$4 sm:$0xff]  }
  0x50   :  { %816 = vmatpush1.bf16.msra.mxu1 %v2013_v43  ;;  %776 = vmatprep.subr.bf16.mxu0 %v2014_v44  ;;  %v2101_v43 = vld [vmem:[#allocation2 + $0x84] ss:$8 sps:$4 sm:$0xff]   ;;  %v2096_v44 = vld [vmem:[#allocation4 + $0x280] ss:$8 sps:$4 sm:$0xff]  }
  0x51   :  { %817 = vmatprep.subr.bf16.mxu1 %v2016_v45  ;;  %v2099_v45 = vld [vmem:[#allocation2 + $0x80] ss:$8 sps:$4 sm:$0xff]  }
  0x53   :  { %777 = vmatpush1.bf16.msra.mxu0 %v2018_v49  ;;  %v2105_v49 = vld [vmem:[#allocation2 + $0x90] ss:$8 sps:$4 sm:$0xff]  }
  0x54   :  { %818 = vmatpush1.bf16.msra.mxu1 %v2019_v50  ;;  %778 = vmatprep.subr.bf16.mxu0 %v2020_v52  ;;  %v2110_v50 = vld [vmem:[#allocation4 + $0x2a4] ss:$8 sps:$4 sm:$0xff]   ;;  %v2108_v52 = vld [vmem:[#allocation4 + $0x2a0] ss:$8 sps:$4 sm:$0xff]  }
  0x55   :  { %819 = vmatprep.subr.bf16.mxu1 %v2022_v53  ;;  %v2111_v53 = vld [vmem:[#allocation2 + $0xa0] ss:$8 sps:$4 sm:$0xff]  }
  0x57   :  { %779 = vmatpush1.bf16.msra.mxu0 %v2024_v54  ;;  %v2116_v54 = vld [vmem:[#allocation4 + $0x2b4] ss:$8 sps:$4 sm:$0xff]  }
  0x58   :  { %820 = vmatpush1.bf16.msra.mxu1 %v2025_v55  ;;  %780 = vmatprep.subr.bf16.mxu0 %v2026_v56  ;;  %v2119_v55 = vld [vmem:[#allocation2 + $0xb4] ss:$8 sps:$4 sm:$0xff]   ;;  %v2114_v56 = vld [vmem:[#allocation4 + $0x2b0] ss:$8 sps:$4 sm:$0xff]  }
  0x59   :  { %821 = vmatprep.subr.bf16.mxu1 %v2028_v57  ;;  %v2117_v57 = vld [vmem:[#allocation2 + $0xb0] ss:$8 sps:$4 sm:$0xff]  }
  0x5b   :  { %781 = vmatpush1.bf16.msra.mxu0 %v2030_v58  ;;  %v2122_v58 = vld [vmem:[#allocation4 + $0x2c4] ss:$8 sps:$4 sm:$0xff]  }
  0x5c   :  { %822 = vmatpush1.bf16.msra.mxu1 %v2031_v59  ;;  %782 = vmatprep.subr.bf16.mxu0 %v2032_v60  ;;  %v2125_v59 = vld [vmem:[#allocation2 + $0xc4] ss:$8 sps:$4 sm:$0xff]   ;;  %v2120_v60 = vld [vmem:[#allocation4 + $0x2c0] ss:$8 sps:$4 sm:$0xff]  }
  0x5d   :  { %823 = vmatprep.subr.bf16.mxu1 %v2034_v61  ;;  %v2123_v61 = vld [vmem:[#allocation2 + $0xc0] ss:$8 sps:$4 sm:$0xff]  }
  0x5f   :  { %783 = vmatpush1.bf16.msra.mxu0 %v2036_v62  ;;  %v2128_v62 = vld [vmem:[#allocation4 + $0x2d4] ss:$8 sps:$4 sm:$0xff]  }
  0x60   :  { %824 = vmatpush1.bf16.msra.mxu1 %v2037_v63  ;;  %784 = vmatprep.subr.bf16.mxu0 %v2038_v0  ;;  %v2131_v63 = vld [vmem:[#allocation2 + $0xd4] ss:$8 sps:$4 sm:$0xff]   ;;  %v2126_v0 = vld [vmem:[#allocation4 + $0x2d0] ss:$8 sps:$4 sm:$0xff]  }
  0x61   :  { %825 = vmatprep.subr.bf16.mxu1 %v2040_v1  ;;  %v2129_v1 = vld [vmem:[#allocation2 + $0xd0] ss:$8 sps:$4 sm:$0xff]  }
  0x63   :  { %785 = vmatpush1.bf16.msra.mxu0 %v2042_v2  ;;  %v2134_v2 = vld [vmem:[#allocation4 + $0x2e4] ss:$8 sps:$4 sm:$0xff]  }
  0x64   :  { %826 = vmatpush1.bf16.msra.mxu1 %v2043_v3  ;;  %836 = vmatprep.subr.bf16.mxu0 %v2050_v4  ;;  %v2137_v3 = vld [vmem:[#allocation2 + $0xe4] ss:$8 sps:$4 sm:$0xff]   ;;  %v2132_v4 = vld [vmem:[#allocation4 + $0x2e0] ss:$8 sps:$4 sm:$0xff]  }
  0x65   :  { %1378 = vmatprep.subr.bf16.mxu1 %v2053_v5  ;;  %v2135_v5 = vld [vmem:[#allocation2 + $0xe0] ss:$8 sps:$4 sm:$0xff]  }
  0x66   :  { %787 = vmatmul.mubr.bf16.vlgmr.msra.gmra.mrb[0].mxu0 %v1701_v6  ;;  %v2140_v6 = vld [vmem:[#allocation4 + $0x2f4] ss:$8 sps:$4 sm:$0xff]  }
  0x67   :  { %828 = vmatmul.mubr.bf16.vlgmr.msra.gmra.mrb[0].mxu1 %v1703_v7  ;;  %837 = vmatpush1.bf16.msra.mxu0 %v2048_v8  ;;  %v2143_v7 = vld [vmem:[#allocation2 + $0xf4] ss:$8 sps:$4 sm:$0xff]   ;;  %v2138_v8 = vld [vmem:[#allocation4 + $0x2f0] ss:$8 sps:$4 sm:$0xff]  }
  0x68   :  { %1379 = vmatpush1.bf16.msra.mxu1 %v2051_v9  ;;  %838 = vmatprep.subr.bf16.mxu0 %v2056_v10  ;;  %v2141_v9 = vld [vmem:[#allocation2 + $0xf0] ss:$8 sps:$4 sm:$0xff]   ;;  %v2150_v10 = vld [vmem:[#allocation2 + $0x104] ss:$8 sps:$4 sm:$0xff]  }
  0x69   :  { %1380 = vmatprep.subr.bf16.mxu1 %v2059_v11  ;;  %868 = vmatprep.mubr.bf16.mxu0 %v1706_v36  ;;  %v2153_v11 = vld [vmem:[#allocation2 + $0x204] ss:$8 sps:$4 sm:$0xff]   ;;  %v2180_v36 = vld [vmem:[#allocation2 + $0x154] ss:$8 sps:$4 sm:$0xff]  }
  0x6a   :  { %1410 = vmatprep.mubr.bf16.mxu1 %v1804_v37  ;;  %v2183_v37 = vld [vmem:[#allocation2 + $0x254] ss:$8 sps:$4 sm:$0xff]  }
  0x6b   :  { %839 = vmatpush1.bf16.msra.mxu0 %v2054_v12  ;;  %v1705_v12 = vcombine.low %v2389_v32, %v2389_v32  ;;  %v2174_v32 = vld [vmem:[#allocation2 + $0x144] ss:$8 sps:$4 sm:$0xff]  }
  0x6c   :  { %1381 = vmatpush1.bf16.msra.mxu1 %v2057_v13  ;;  %840 = vmatprep.subr.bf16.mxu0 %v2062_v14  ;;  %v1803_v13 = vcombine.low %v2394_v33, %v2394_v33  ;;  %v2148_v14 = vld [vmem:[#allocation2 + $0x100] ss:$8 sps:$4 sm:$0xff]   ;;  %v2177_v33 = vld [vmem:[#allocation2 + $0x244] ss:$8 sps:$4 sm:$0xff]  }
  0x6d   :  { %1382 = vmatprep.subr.bf16.mxu1 %v2065_v15  ;;  %v2151_v15 = vld [vmem:[#allocation2 + $0x200] ss:$8 sps:$4 sm:$0xff]  }
  0x6f   :  { %841 = vmatpush1.bf16.msra.mxu0 %v2060_v16  ;;  %v2156_v16 = vld [vmem:[#allocation2 + $0x114] ss:$8 sps:$4 sm:$0xff]  }
  0x70   :  { %1383 = vmatpush1.bf16.msra.mxu1 %v2063_v17  ;;  %842 = vmatprep.subr.bf16.mxu0 %v2068_v18  ;;  %v2159_v17 = vld [vmem:[#allocation2 + $0x214] ss:$8 sps:$4 sm:$0xff]   ;;  %v2407_v18 = vld [vmem:[%s2479_s0 + $0x8] sm:$0xff] }
  0x71   :  { %1384 = vmatprep.subr.bf16.mxu1 %v2071_v19  ;;  %v2412_v19 = vld [vmem:[%s2479_s0 + $0x10] sm:$0xff] }
  0x73   :  { %843 = vmatpush1.bf16.msra.mxu0 %v2066_v20  ;;  %v2154_v20 = vld [vmem:[#allocation2 + $0x110] ss:$8 sps:$4 sm:$0xff]  }
  0x74   :  { %1385 = vmatpush1.bf16.msra.mxu1 %v2069_v21  ;;  %844 = vmatprep.subr.bf16.mxu0 %v2074_v22  ;;  %v2157_v21 = vld [vmem:[#allocation2 + $0x210] ss:$8 sps:$4 sm:$0xff]   ;;  %v1806_v22 = vcombine.high %v2407_v18, %v2407_v18 }
  0x75   :  { %1386 = vmatprep.subr.bf16.mxu1 %v2077_v23  ;;  %v1808_v23 = vcombine.high %v2412_v19, %v2412_v19 }
  0x77   :  { %845 = vmatpush1.bf16.msra.mxu0 %v2072_v24  ;;  %v2162_v24 = vld [vmem:[#allocation2 + $0x124] ss:$8 sps:$4 sm:$0xff]  }
  0x78   :  { %1387 = vmatpush1.bf16.msra.mxu1 %v2075_v25  ;;  %846 = vmatprep.subr.bf16.mxu0 %v2080_v26  ;;  %v2165_v25 = vld [vmem:[#allocation2 + $0x224] ss:$8 sps:$4 sm:$0xff]   ;;  %v2160_v26 = vld [vmem:[#allocation2 + $0x120] ss:$8 sps:$4 sm:$0xff]  }
  0x79   :  { %1388 = vmatprep.subr.bf16.mxu1 %v2083_v27  ;;  %v2163_v27 = vld [vmem:[#allocation2 + $0x220] ss:$8 sps:$4 sm:$0xff]  }
  0x7b   :  { %847 = vmatpush1.bf16.msra.mxu0 %v2078_v28  ;;  %v2168_v28 = vld [vmem:[#allocation2 + $0x134] ss:$8 sps:$4 sm:$0xff]  }
  0x7c   :  { %1389 = vmatpush1.bf16.msra.mxu1 %v2081_v29  ;;  %848 = vmatprep.subr.bf16.mxu0 %v2086_v30  ;;  %v2171_v29 = vld [vmem:[#allocation2 + $0x234] ss:$8 sps:$4 sm:$0xff]   ;;  %v2166_v30 = vld [vmem:[#allocation2 + $0x130] ss:$8 sps:$4 sm:$0xff]  }
  0x7d   :  { %1390 = vmatprep.subr.bf16.mxu1 %v2089_v31  ;;  %v2169_v31 = vld [vmem:[#allocation2 + $0x230] ss:$8 sps:$4 sm:$0xff]  }
  0x7f   :  { %849 = vmatpush1.bf16.msra.mxu0 %v2084_v34  ;;  %v2172_v34 = vld [vmem:[#allocation2 + $0x140] ss:$8 sps:$4 sm:$0xff]  }
  0x80   :  { %1391 = vmatpush1.bf16.msra.mxu1 %v2087_v35  ;;  %850 = vmatprep.subr.bf16.mxu0 %v2092_v38  ;;  %v2175_v35 = vld [vmem:[#allocation2 + $0x240] ss:$8 sps:$4 sm:$0xff]   ;;  %v2178_v38 = vld [vmem:[#allocation2 + $0x150] ss:$8 sps:$4 sm:$0xff]  }
  0x81   :  { %1392 = vmatprep.subr.bf16.mxu1 %v2095_v39  ;;  %v2181_v39 = vld [vmem:[#allocation2 + $0x250] ss:$8 sps:$4 sm:$0xff]  }
  0x83   :  { %851 = vmatpush1.bf16.msra.mxu0 %v2090_v40  ;;  %v2186_v40 = vld [vmem:[#allocation2 + $0x164] ss:$8 sps:$4 sm:$0xff]  }
  0x84   :  { %1393 = vmatpush1.bf16.msra.mxu1 %v2093_v41  ;;  %852 = vmatprep.subr.bf16.mxu0 %v2098_v42  ;;  %v2189_v41 = vld [vmem:[#allocation2 + $0x264] ss:$8 sps:$4 sm:$0xff]   ;;  %v2184_v42 = vld [vmem:[#allocation2 + $0x160] ss:$8 sps:$4 sm:$0xff]  }
  0x85   :  { %1394 = vmatprep.subr.bf16.mxu1 %v2101_v43  ;;  %v2187_v43 = vld [vmem:[#allocation2 + $0x260] ss:$8 sps:$4 sm:$0xff]  }
  0x87   :  { %853 = vmatpush1.bf16.msra.mxu0 %v2096_v44  ;;  %v2192_v44 = vld [vmem:[#allocation2 + $0x174] ss:$8 sps:$4 sm:$0xff]  }
  0x88   :  { %1395 = vmatpush1.bf16.msra.mxu1 %v2099_v45  ;;  %854 = vmatprep.subr.bf16.mxu0 %v2104_v46  ;;  %v2195_v45 = vld [vmem:[#allocation2 + $0x274] ss:$8 sps:$4 sm:$0xff]   ;;  %v2190_v46 = vld [vmem:[#allocation2 + $0x170] ss:$8 sps:$4 sm:$0xff]  }
  0x89   :  { %1396 = vmatprep.subr.bf16.mxu1 %v2107_v47  ;;  %v2193_v47 = vld [vmem:[#allocation2 + $0x270] ss:$8 sps:$4 sm:$0xff]  }
  0x8b   :  { %855 = vmatpush1.bf16.msra.mxu0 %v2102_v48  ;;  %v2198_v48 = vld [vmem:[#allocation2 + $0x184] ss:$8 sps:$4 sm:$0xff]  }
  0x8c   :  { %1397 = vmatpush1.bf16.msra.mxu1 %v2105_v49  ;;  %856 = vmatprep.subr.bf16.mxu0 %v2110_v50  ;;  %v2201_v49 = vld [vmem:[#allocation2 + $0x284] ss:$8 sps:$4 sm:$0xff]   ;;  %v2196_v50 = vld [vmem:[#allocation2 + $0x180] ss:$8 sps:$4 sm:$0xff]  }
  0x8d   :  { %1398 = vmatprep.subr.bf16.mxu1 %v2113_v51  ;;  %v2199_v51 = vld [vmem:[#allocation2 + $0x280] ss:$8 sps:$4 sm:$0xff]  }
  0x8f   :  { %857 = vmatpush1.bf16.msra.mxu0 %v2108_v52  ;;  %v2204_v52 = vld [vmem:[#allocation2 + $0x194] ss:$8 sps:$4 sm:$0xff]  }
  0x90   :  { %1399 = vmatpush1.bf16.msra.mxu1 %v2111_v53  ;;  %858 = vmatprep.subr.bf16.mxu0 %v2116_v54  ;;  %v2207_v53 = vld [vmem:[#allocation2 + $0x294] ss:$8 sps:$4 sm:$0xff]   ;;  %v2202_v54 = vld [vmem:[#allocation2 + $0x190] ss:$8 sps:$4 sm:$0xff]  }
  0x91   :  { %1400 = vmatprep.subr.bf16.mxu1 %v2119_v55  ;;  %v2205_v55 = vld [vmem:[#allocation2 + $0x290] ss:$8 sps:$4 sm:$0xff]  }
  0x93   :  { %859 = vmatpush1.bf16.msra.mxu0 %v2114_v56  ;;  %v2210_v56 = vld [vmem:[#allocation2 + $0x1a4] ss:$8 sps:$4 sm:$0xff]  }
  0x94   :  { %1401 = vmatpush1.bf16.msra.mxu1 %v2117_v57  ;;  %860 = vmatprep.subr.bf16.mxu0 %v2122_v58  ;;  %v2213_v57 = vld [vmem:[#allocation2 + $0x2a4] ss:$8 sps:$4 sm:$0xff]   ;;  %v2208_v58 = vld [vmem:[#allocation2 + $0x1a0] ss:$8 sps:$4 sm:$0xff]  }
  0x95   :  { %1402 = vmatprep.subr.bf16.mxu1 %v2125_v59  ;;  %v2211_v59 = vld [vmem:[#allocation2 + $0x2a0] ss:$8 sps:$4 sm:$0xff]  }
  0x97   :  { %861 = vmatpush1.bf16.msra.mxu0 %v2120_v60  ;;  %v2216_v60 = vld [vmem:[#allocation2 + $0x1b4] ss:$8 sps:$4 sm:$0xff]  }
  0x98   :  { %1403 = vmatpush1.bf16.msra.mxu1 %v2123_v61  ;;  %862 = vmatprep.subr.bf16.mxu0 %v2128_v62  ;;  %v2219_v61 = vld [vmem:[#allocation2 + $0x2b4] ss:$8 sps:$4 sm:$0xff]   ;;  %v2214_v62 = vld [vmem:[#allocation2 + $0x1b0] ss:$8 sps:$4 sm:$0xff]  }
  0x99   :  { %1404 = vmatprep.subr.bf16.mxu1 %v2131_v63  ;;  %v2217_v63 = vld [vmem:[#allocation2 + $0x2b0] ss:$8 sps:$4 sm:$0xff]  }
  0x9b   :  { %863 = vmatpush1.bf16.msra.mxu0 %v2126_v0  ;;  %v2222_v0 = vld [vmem:[#allocation2 + $0x1c4] ss:$8 sps:$4 sm:$0xff]  }
  0x9c   :  { %1405 = vmatpush1.bf16.msra.mxu1 %v2129_v1  ;;  %864 = vmatprep.subr.bf16.mxu0 %v2134_v2  ;;  %v2225_v1 = vld [vmem:[#allocation2 + $0x2c4] ss:$8 sps:$4 sm:$0xff]   ;;  %v2220_v2 = vld [vmem:[#allocation2 + $0x1c0] ss:$8 sps:$4 sm:$0xff]  }
  0x9d   :  { %1406 = vmatprep.subr.bf16.mxu1 %v2137_v3  ;;  %v2223_v3 = vld [vmem:[#allocation2 + $0x2c0] ss:$8 sps:$4 sm:$0xff]  }
  0x9f   :  { %865 = vmatpush1.bf16.msra.mxu0 %v2132_v4  ;;  %v2228_v4 = vld [vmem:[#allocation2 + $0x1d4] ss:$8 sps:$4 sm:$0xff]  }
  0xa0   :  { %1407 = vmatpush1.bf16.msra.mxu1 %v2135_v5  ;;  %866 = vmatprep.subr.bf16.mxu0 %v2140_v6  ;;  %v2231_v5 = vld [vmem:[#allocation2 + $0x2d4] ss:$8 sps:$4 sm:$0xff]   ;;  %v2226_v6 = vld [vmem:[#allocation2 + $0x1d0] ss:$8 sps:$4 sm:$0xff]  }
  0xa1   :  { %1408 = vmatprep.subr.bf16.mxu1 %v2143_v7  ;;  %v2229_v7 = vld [vmem:[#allocation2 + $0x2d0] ss:$8 sps:$4 sm:$0xff]  }
  0xa3   :  { %867 = vmatpush1.bf16.msra.mxu0 %v2138_v8  ;;  %v2234_v8 = vld [vmem:[#allocation2 + $0x1e4] ss:$8 sps:$4 sm:$0xff]  }
  0xa4   :  { %1409 = vmatpush1.bf16.msra.mxu1 %v2141_v9  ;;  %1419 = vmatprep.subr.bf16.mxu0 %v2150_v10  ;;  %v2237_v9 = vld [vmem:[#allocation2 + $0x2e4] ss:$8 sps:$4 sm:$0xff]   ;;  %v2232_v10 = vld [vmem:[#allocation2 + $0x1e0] ss:$8 sps:$4 sm:$0xff]  }
  0xa5   :  { %1460 = vmatprep.subr.bf16.mxu1 %v2153_v11  ;;  %v2235_v11 = vld [vmem:[#allocation2 + $0x2e0] ss:$8 sps:$4 sm:$0xff]  }
  0xa6   :  { %869 = vmatmul.mubr.bf16.vlgmr.msra.gmra.mrb[4].mxu0 %v1705_v12  ;;  %v2240_v12 = vld [vmem:[#allocation2 + $0x1f4] ss:$8 sps:$4 sm:$0xff]  }
  0xa7   :  { %1411 = vmatmul.mubr.bf16.vlgmr.msra.gmra.mrb[4].mxu1 %v1803_v13  ;;  %1420 = vmatpush1.bf16.msra.mxu0 %v2148_v14  ;;  %v2243_v13 = vld [vmem:[#allocation2 + $0x2f4] ss:$8 sps:$4 sm:$0xff]   ;;  %v2238_v14 = vld [vmem:[#allocation2 + $0x1f0] ss:$8 sps:$4 sm:$0xff]  }
  0xa8   :  { %1461 = vmatpush1.bf16.msra.mxu1 %v2151_v15  ;;  %1421 = vmatprep.subr.bf16.mxu0 %v2156_v16  ;;  %v2241_v15 = vld [vmem:[#allocation2 + $0x2f0] ss:$8 sps:$4 sm:$0xff]   ;;  %v1805_v16 = vcombine.low %v2407_v18, %v2407_v18  ;;  %v2251_v18 = vld [vmem:[%s2484_s5 + $0x8] sm:$0xff]  }
  0xa9   :  { %1462 = vmatprep.subr.bf16.mxu1 %v2159_v17  ;;  %1451 = vmatprep.mubr.bf16.mxu0 %v1806_v22  ;;  %v1807_v17 = vcombine.low %v2412_v19, %v2412_v19  ;;  %v2250_v22 = vld [vmem:[%s2484_s5 + $0x48] sm:$0xff]   ;;  %v2252_v19 = vld [vmem:[%s2484_s5 + $0x50] sm:$0xff]  }
  0xaa   :  { %1492 = vmatprep.mubr.bf16.mxu1 %v1808_v23  ;;  %v2253_v23 = vld [vmem:[%s2484_s5 + $0x10] sm:$0xff]  }
  0xab   :  { %1422 = vmatpush1.bf16.msra.mxu0 %v2154_v20  ;;  %v2248_v20 = vld [vmem:[%s2484_s5 + $0x40] sm:$0xff]  }
  0xac   :  { %1463 = vmatpush1.bf16.msra.mxu1 %v2157_v21  ;;  %1423 = vmatprep.subr.bf16.mxu0 %v2162_v24  ;;  %v2249_v21 = vld [vmem:[%s2484_s5] sm:$0xff]   ;;  %v2254_v24 = vld [vmem:[%s2484_s5 + $0x58] sm:$0xff]  }
  0xad   :  { %1464 = vmatprep.subr.bf16.mxu1 %v2165_v25  ;;  %v2255_v25 = vld [vmem:[%s2484_s5 + $0x18] sm:$0xff]  }
  0xaf   :  { %1424 = vmatpush1.bf16.msra.mxu0 %v2160_v26  ;;  %v2256_v26 = vld [vmem:[%s2484_s5 + $0x60] sm:$0xff]  }
  0xb0   :  { %1465 = vmatpush1.bf16.msra.mxu1 %v2163_v27  ;;  %1425 = vmatprep.subr.bf16.mxu0 %v2168_v28  ;;  %v2257_v27 = vld [vmem:[%s2484_s5 + $0x20] sm:$0xff]   ;;  %v2258_v28 = vld [vmem:[%s2484_s5 + $0x68] sm:$0xff]  }
  0xb1   :  { %1466 = vmatprep.subr.bf16.mxu1 %v2171_v29 }
  0xb3   :  { %1426 = vmatpush1.bf16.msra.mxu0 %v2166_v30 }
  0xb4   :  { %1467 = vmatpush1.bf16.msra.mxu1 %v2169_v31  ;;  %1427 = vmatprep.subr.bf16.mxu0 %v2174_v32  ;;  %v2259_v31 = vld [vmem:[%s2484_s5 + $0x28] sm:$0xff]  }
  0xb5   :  { %1468 = vmatprep.subr.bf16.mxu1 %v2177_v33 }
  0xb7   :  { %1428 = vmatpush1.bf16.msra.mxu0 %v2172_v34 }
  0xb8   :  { %1469 = vmatpush1.bf16.msra.mxu1 %v2175_v35  ;;  %1429 = vmatprep.subr.bf16.mxu0 %v2180_v36 }
  0xb9   :  { %1470 = vmatprep.subr.bf16.mxu1 %v2183_v37 }
  0xbb   :  { %1430 = vmatpush1.bf16.msra.mxu0 %v2178_v38 }
  0xbc   :  { %1471 = vmatpush1.bf16.msra.mxu1 %v2181_v39  ;;  %1431 = vmatprep.subr.bf16.mxu0 %v2186_v40  ;;  %v2260_v40 = vld [vmem:[%s2484_s5 + $0x70] sm:$0xff]  }
  0xbd   :  { %1472 = vmatprep.subr.bf16.mxu1 %v2189_v41  ;;  %v2261_v41 = vld [vmem:[%s2484_s5 + $0x30] sm:$0xff]  }
  0xbf   :  { %1432 = vmatpush1.bf16.msra.mxu0 %v2184_v42  ;;  %v2262_v42 = vld [vmem:[%s2484_s5 + $0x78] sm:$0xff]  }
  0xc0   :  { %1473 = vmatpush1.bf16.msra.mxu1 %v2187_v43  ;;  %1433 = vmatprep.subr.bf16.mxu0 %v2192_v44  ;;  %v2263_v43 = vld [vmem:[%s2484_s5 + $0x38] sm:$0xff]  }
  0xc1   :  { %1474 = vmatprep.subr.bf16.mxu1 %v2195_v45 }
  0xc3   :  { %1434 = vmatpush1.bf16.msra.mxu0 %v2190_v46 }
  0xc4   :  { %1475 = vmatpush1.bf16.msra.mxu1 %v2193_v47  ;;  %1435 = vmatprep.subr.bf16.mxu0 %v2198_v48 }
  0xc5   :  { %1476 = vmatprep.subr.bf16.mxu1 %v2201_v49 }
  0xc7   :  { %1436 = vmatpush1.bf16.msra.mxu0 %v2196_v50 }
  0xc8   :  { %1477 = vmatpush1.bf16.msra.mxu1 %v2199_v51  ;;  %1437 = vmatprep.subr.bf16.mxu0 %v2204_v52 }
  0xc9   :  { %1478 = vmatprep.subr.bf16.mxu1 %v2207_v53 }
  0xcb   :  { %1438 = vmatpush1.bf16.msra.mxu0 %v2202_v54 }
  0xcc   :  { %1479 = vmatpush1.bf16.msra.mxu1 %v2205_v55  ;;  %1439 = vmatprep.subr.bf16.mxu0 %v2210_v56  ;;  %v1503_v56 = vlaneseq }
  0xcd   :  { %1480 = vmatprep.subr.bf16.mxu1 %v2213_v57 }
  0xce   :  { %v1504_v57 = vshrl.u32 %v1503_v56, 7 }
  0xcf   :  { %1440 = vmatpush1.bf16.msra.mxu0 %v2208_v58 }
  0xd0   :  { %1481 = vmatpush1.bf16.msra.mxu1 %v2211_v59  ;;  %1441 = vmatprep.subr.bf16.mxu0 %v2216_v60  ;;  %v1505_v58 = vsub.s32 0, %v1504_v57  ;;  %v1501_v59 = vld [vmem:[%s2483_s4] sm:$0x3]  ;;  %v1509_v60 = vsub.s32 1, %v1504_v57 }
  0xd1   :  { %1482 = vmatprep.subr.bf16.mxu1 %v2219_v61 }
  0xd3   :  { %1442 = vmatpush1.bf16.msra.mxu0 %v2214_v62 }
  0xd4   :  { %1483 = vmatpush1.bf16.msra.mxu1 %v2217_v63  ;;  %1443 = vmatprep.subr.bf16.mxu0 %v2222_v0  ;;  %v1506_v0 = vrot.slane %v1501_v59, %v1505_v58 }
  0xd5   :  { %1484 = vmatprep.subr.bf16.mxu1 %v2225_v1 }
  0xd7   :  { %1444 = vmatpush1.bf16.msra.mxu0 %v2220_v2 }
  0xd8   :  { %1485 = vmatpush1.bf16.msra.mxu1 %v2223_v3  ;;  %1445 = vmatprep.subr.bf16.mxu0 %v2228_v4  ;;  %v1510_v4 = vrot.slane %v1501_v59, %v1509_v60 }
  0xd9   :  { %1486 = vmatprep.subr.bf16.mxu1 %v2231_v5 }
  0xdb   :  { %1446 = vmatpush1.bf16.msra.mxu0 %v2226_v6 }
  0xdc   :  { %1487 = vmatpush1.bf16.msra.mxu1 %v2229_v7  ;;  %1447 = vmatprep.subr.bf16.mxu0 %v2234_v8 }
  0xdd   :  { %1488 = vmatprep.subr.bf16.mxu1 %v2237_v9 }
  0xdf   :  { %1448 = vmatpush1.bf16.msra.mxu0 %v2232_v10 }
  0xe0   :  { %1489 = vmatpush1.bf16.msra.mxu1 %v2235_v11  ;;  %1449 = vmatprep.subr.bf16.mxu0 %v2240_v12 }
  0xe1   :  { %1490 = vmatprep.subr.bf16.mxu1 %v2243_v13 }
  0xe3   :  { %1450 = vmatpush1.bf16.msra.mxu0 %v2238_v14 }
  0xe4   :  { %1491 = vmatpush1.bf16.msra.mxu1 %v2241_v15  ;;  %1922 = vmatprep.subr.bf16.mxu0 %v2248_v20  ;;  %v1905_v20 = vld [vmem:[%s2485_s6] ss:$0 sm:$0xff] }
  0xe6   :  { %1452 = vmatmul.mubr.bf16.vlgmr.msra.gmra.mrb[8].mxu0 %v1805_v16 }
  0xe7   :  { %1493 = vmatmul.mubr.bf16.vlgmr.msra.gmra.mrb[8].mxu1 %v1807_v17  ;;  %1923 = vmatpush3.bf16.msra.mxu0 %v2249_v21 }
  0xe8   :  { %1924 = vmatprep.subr.bf16.mxu0 %v2250_v22 }
  0xeb   :  { %1925 = vmatpush3.bf16.msra.mxu0 %v2251_v18 }
  0xec   :  { %1926 = vmatprep.subr.bf16.mxu0 %v2252_v19 }
  0xef   :  { %1927 = vmatpush3.bf16.msra.mxu0 %v2253_v23 }
  0xf0   :  { %1928 = vmatprep.subr.bf16.mxu0 %v2254_v24 }
  0xf3   :  { %1929 = vmatpush3.bf16.msra.mxu0 %v2255_v25 }
  0xf4   :  { %1930 = vmatprep.subr.bf16.mxu0 %v2256_v26 }
  0xf7   :  { %1931 = vmatpush3.bf16.msra.mxu0 %v2257_v27 }
  0xf8   :  { %1932 = vmatprep.subr.bf16.mxu0 %v2258_v28 }
  0xfb   :  { %1933 = vmatpush3.bf16.msra.mxu0 %v2259_v31 }
  0xfc   :  { %1934 = vmatprep.subr.bf16.mxu0 %v2260_v40 }
  0xff   :  { %1935 = vmatpush3.bf16.msra.mxu0 %v2261_v41 }
 0x100   :  { %1936 = vmatprep.subr.bf16.mxu0 %v2262_v42 }
 0x103   :  { %1937 = vmatpush3.bf16.msra.mxu0 %v2263_v43 }
 0x139   :  { %v788_v29 = vpop.f32.mrb[0].mxu0 }
 0x13a   :  { %v829_v30 = vpop.f32.mrb[0].mxu1  ;;  %v790_v33 = vpop.f32.mrb[1].mxu0 }
 0x13b   :  { %v830_v32 = vadd.f32 %v829_v30, %v788_v29  ;;  %v831_v34 = vpop.f32.mrb[1].mxu1  ;;  %v792_v36 = vpop.f32.mrb[2].mxu0 }
 0x13c   :  { %v832_v35 = vadd.f32 %v831_v34, %v790_v33  ;;  %v833_v37 = vpop.f32.mrb[2].mxu1  ;;  %v793_v38 = vpop.f32.mrb[3].mxu0 }
 0x13d   :  { %v834_v39 = vpop.f32.mrb[3].mxu1 }
 0x179   :  { %v870_v44 = vpop.f32.mrb[4].mxu0 }
 0x17a   :  { %v1412_v45 = vpop.f32.mrb[4].mxu1  ;;  %v871_v46 = vadd.f32 %v870_v44, %v830_v32  ;;  %v872_v47 = vpop.f32.mrb[5].mxu0 }
 0x17b   :  { %v1414_v48 = vpop.f32.mrb[5].mxu1  ;;  %v873_v49 = vadd.f32 %v872_v47, %v832_v35  ;;  %v874_v50 = vpop.f32.mrb[6].mxu0 }
 0x17c   :  { %v1416_v51 = vpop.f32.mrb[6].mxu1  ;;  %v1413_v52 = vadd.f32 %v1412_v45, %v871_v46  ;;  %v875_v53 = vpop.f32.mrb[7].mxu0 }
 0x17d   :  { %v1417_v54 = vpop.f32.mrb[7].mxu1  ;;  %v1415_v55 = vadd.f32 %v1414_v48, %v873_v49 }
 0x1b9   :  { %v1453_v61 = vpop.f32.mrb[8].mxu0 }
 0x1ba   :  { %v1494_v62 = vpop.f32.mrb[8].mxu1  ;;  %v1454_v63 = vadd.f32 %v1453_v61, %v1413_v52  ;;  %v1455_v1 = vpop.f32.mrb[9].mxu0 }
 0x1bb   :  { %v1496_v2 = vpop.f32.mrb[9].mxu1  ;;  %v1456_v3 = vadd.f32 %v1455_v1, %v1415_v55  ;;  %v1457_v5 = vpop.f32.mrb[10].mxu0 }
 0x1bc   :  { %v1498_v6 = vpop.f32.mrb[10].mxu1  ;;  %v1495_v7 = vadd.f32 %v1494_v62, %v1454_v63  ;;  %v1458_v8 = vpop.f32.mrb[11].mxu0 }
 0x1bd   :  { %v1499_v9 = vpop.f32.mrb[11].mxu1  ;;  %v1497_v10 = vadd.f32 %v1496_v2, %v1456_v3 }
 0x1be   :  { %v1513_v11 = vadd.f32 %v1506_v0, %v1495_v7 }
 0x1bf   :  { %v1514_v12 = vadd.f32 %v1510_v4, %v1497_v10 }
 0x1c0   :  { %v1515_v13 = vmax.f32 %v1513_v11, 0.0 }
 0x1c1   :  { %v1516_v14 = vmax.f32 %v1514_v12, 0.0 }
 0x1c2   :  { %v1517_v16 = vpack.c.bf16 %v1515_v13, %v1515_v13 }
 0x1c3   :  { %v1518_v15 = vpack.c.bf16 %v1516_v14, %v1516_v14 }
 0x1c5   :  { %1686 = vmatprep.mubr.bf16.mxu0 %v1518_v15 }
 0x1c6   :  { %1687 = vmatmul.mubr.bf16.vlgmr.msra.gmra.mrb[12].mxu0 %v1517_v16 }
 0x299   :  { %v1938_v17 = vpop.f32.mrb[12].mxu0 }
 0x29a   :  { %v1939_v21 = vpop.f32.mrb[13].mxu0 }
 0x29b   :  { %v1940_v22 = vadd.f32 %v1939_v21, %v1938_v17  ;;  %v1941_v18 = vpop.f32.mrb[14].mxu0 }
 0x29c   :  { %v1942_v19 = vpop.f32.mrb[15].mxu0 }
 0x29d   :  { %v1689_v23 = vadd.f32 %v1940_v22, %v1905_v20 }
 0x29f   :  { %1694 = vst [vmem:[%s2486_s7] sm:$0xff] %v1689_v23 }
 0x2a0   :  { %1699 = vsyncpa [#allocation3], 1 }
 0x2a1   :  { %1700 = vsyncpa [#allocation5], 1 }

</bundles_post_ra>
